<compile_context>
chip_gen: v5e
topology: v5e:2x2
jax: 0.10.0
libtpu: 0.0.40
codegen_flags: <defaults>
</compile_context>

<pallas_src>
import functools
import math

import jax
import jax.numpy as jnp
from jax import lax
from jax.experimental import pallas as pl
from jax.experimental.pallas import tpu as pltpu


# Rows of the packed (n_stacks, 6, H, H) square-weight tensor (bf16).
W_SA_V, W_SA_D, W_CA_Q, W_CA_K, W_CA_V, W_CA_O = range(6)
N_SQ = 6

# Rows of the packed (n_stacks, N_VEC, max(H, F)) bias / LayerNorm-affine tensor (f32).
(V_SA_BV, V_SA_BD, V_SA_G, V_SA_B,
 V_CA_BO, V_CA_G, V_CA_B,
 V_FF_B1, V_FF_B2, V_FF_G, V_FF_B) = range(11)
N_VEC = 11


def _layernorm(x, gamma, beta, eps):
    # Matches both the custom LayerNorm (eps=1e-12) and nn.LayerNorm (eps=1e-5):
    # biased variance, (x - u) * rsqrt(var + eps), then affine.  rsqrt -> EUP slot.
    u = jnp.mean(x, axis=-1, keepdims=True)
    d = x - u
    s = jnp.mean(d * d, axis=-1, keepdims=True)
    return gamma * (d * lax.rsqrt(s + eps)) + beta


def _segment_matrices(H, heads, dtype):
    """Constant 0/1 head-segment matrices: seg (H, heads) sums lanes within a head,
    segT (heads, H) broadcasts per-head values back to the H lanes.  Exact in bf16."""
    hs = H // heads
    head_of_lane = jnp.arange(H) // hs
    seg = (head_of_lane[:, None] == jnp.arange(heads)[None, :]).astype(dtype)
    return seg, jnp.transpose(seg)


def _fused_stack_kernel(B, S, H, F, heads, compute_dtype,
                        x1_ref, x2_ref, seg_ref, segT_ref,
                        wsq_ref, ffw1_ref, ffw2_ref, vec_ref,
                        out_ref):
    s_idx = pl.program_id(0)            # stack index ("arbitrary" sequential axis)
    hs = H // heads
    inv_sqrt_hs = 1.0 / math.sqrt(hs)   # CalculateAttention divides by sqrt(Q.size(-1)) = sqrt(h_size)

    # out_ref doubles as the resident activation carrier (accumulator-in-output pattern):
    # constant-index out_spec => the block stays in VMEM across the whole grid and is written
    # back to HBM exactly once at the end.
    @pl.when(s_idx == 0)
    def _():
        out_ref[...] = x1_ref[...].astype(out_ref.dtype)

    x = out_ref[...]                    # (B, H) f32, carried across stacks
    x2 = x2_ref[...]                    # (B*S, H) bf16, DMA'd once (constant index_map)

    def mm(a, w):
        # bf16 MXU operands, f32 accumulation.
        return jnp.dot(a.astype(compute_dtype), w, preferred_element_type=jnp.float32)

    def vec(row, n):
        # (1, n) slice of the packed bias/affine tensor; broadcasts over the batch rows.
        return vec_ref[row:row + 1, :n]

    # ---------------- SelfAttention ----------------
    # After unsqueeze(1) the sequence length is 1: softmax over a single key is exactly 1.0, so the
    # attention context equals the value projection (exact in eval mode: attn dropout = identity;
    # the query/key projections do not affect the output on this path).
    v_sa = mm(x, wsq_ref[W_SA_V]) + vec(V_SA_BV, H)
    dense = mm(v_sa, wsq_ref[W_SA_D]) + vec(V_SA_BD, H)
    x = _layernorm(dense + x, vec(V_SA_G, H), vec(V_SA_B, H), 1e-12)

    # ---------------- Multi_CrossAttention ----------------
    q = mm(x, wsq_ref[W_CA_Q])                              # (B, H)
    k = mm(x2, wsq_ref[W_CA_K])                             # (B*S, H)  separate matmuls: no
    v = mm(x2, wsq_ref[W_CA_V])                             # (B*S, H)  lane-misaligned kv split

    # Head-batched attention with no per-head slicing / concat: per-head segment sums over the
    # hs-lane chunks are matmuls with the constant 0/1 seg/segT matrices (MXU, bf16 single-pass).
    qk = (q.reshape(B, 1, H) * k.reshape(B, S, H)).reshape(B * S, H)        # q*k products, all heads
    scores = jnp.dot(qk.astype(compute_dtype), seg_ref[...],
                     preferred_element_type=jnp.float32)                    # (B*S, heads)
    scores = scores.reshape(B, S, heads) * inv_sqrt_hs
    # softmax over keys (axis=1), one pipeline for all heads
    m = jnp.max(scores, axis=1, keepdims=True)
    e = jnp.exp(scores - m)
    p = e * pl.reciprocal(jnp.sum(e, axis=1, keepdims=True), approx=True)   # (B, S, heads)
    # broadcast head probs back to the H lanes (MXU), weight V, reduce over keys
    p_exp = jnp.dot(p.reshape(B * S, heads).astype(compute_dtype), segT_ref[...],
                    preferred_element_type=jnp.float32)                     # (B*S, H)
    ctx = jnp.sum((p_exp * v).reshape(B, S, H), axis=1)                     # (B, H)

    o = mm(ctx, wsq_ref[W_CA_O]) + vec(V_CA_BO, H)
    x = _layernorm(o + x, vec(V_CA_G, H), vec(V_CA_B, H), 1e-5)

    # ---------------- FeedForward ----------------
    h1 = jnp.maximum(mm(x, ffw1_ref[...]) + vec(V_FF_B1, F), 0.0)
    h2 = mm(h1, ffw2_ref[...]) + vec(V_FF_B2, H)
    x = _layernorm(x + h2, vec(V_FF_G, H), vec(V_FF_B, H), 1e-5)

    out_ref[...] = x                    # carry to next stack (stays resident in VMEM)


def init_params(key, H, F, n_stacks, compute_dtype=jnp.bfloat16):
    """Packed per-stack parameters.

    w_sq : (n_stacks, 6, H, H) bf16 — sa_value, sa_dense, ca_q, ca_k, ca_v, ca_out (pre-transposed
           (in, out) so the kernel computes x @ W).
    ff_w1: (n_stacks, H, F) bf16;  ff_w2: (n_stacks, F, H) bf16.
    vecs : (n_stacks, N_VEC, max(H, F)) f32 — all biases and LayerNorm affines, zero-padded lanes.
    """
    P = max(H, F)
    ks = jax.random.split(key, 6)

    def w(k, shape, scale=0.05):
        return (scale * jax.random.normal(k, (n_stacks,) + shape)).astype(compute_dtype)

    w_sq = w(ks[0], (N_SQ, H, H))
    ff_w1 = w(ks[1], (H, F))
    ff_w2 = w(ks[2], (F, H))

    vecs = jnp.zeros((n_stacks, N_VEC, P), jnp.float32)
    for row in (V_SA_G, V_CA_G, V_FF_G):                       # LayerNorm gammas = 1
        vecs = vecs.at[:, row, :H].set(1.0)
    vecs = vecs.at[:, V_CA_BO, :H].set(0.05 * jax.random.normal(ks[3], (n_stacks, H)))
    vecs = vecs.at[:, V_FF_B1, :F].set(0.05 * jax.random.normal(ks[4], (n_stacks, F)))
    vecs = vecs.at[:, V_FF_B2, :H].set(0.05 * jax.random.normal(ks[5], (n_stacks, H)))
    # sa biases and LayerNorm betas stay zero (matches the module's _init_weights convention).

    return {"w_sq": w_sq, "ff_w1": ff_w1, "ff_w2": ff_w2, "vecs": vecs}


def stacked_model_forward(gene_embedding, image_embedding, params, heads):
    B, H = gene_embedding.shape
    Bi, S, Hi = image_embedding.shape
    assert Bi == B and Hi == H and H % heads == 0
    F = params["ff_w1"].shape[-1]
    n_stacks = params["w_sq"].shape[0]
    compute_dtype = params["w_sq"].dtype

    # x2 is only an MXU operand (K/V projections): cast once on the host, DMA once, stay resident.
    x2_flat = image_embedding.reshape(B * S, H).astype(compute_dtype)
    seg, segT = _segment_matrices(H, heads, compute_dtype)     # host-side constants, DMA'd once

    kernel = functools.partial(_fused_stack_kernel, B, S, H, F, heads, compute_dtype)

    def resident_spec(shape):
        # whole-array block, constant index_map -> DMA'd once, resident across the stack axis
        nd = len(shape)
        return pl.BlockSpec(shape, lambda s, nd=nd: (0,) * nd)

    def stacked_spec(shape):
        # per-stack slice of a (n_stacks, ...) array; leading axis squeezed in the kernel
        trailing = tuple(shape[1:])
        nt = len(trailing)
        return pl.BlockSpec((None,) + trailing, lambda s, nt=nt: (s,) + (0,) * nt)

    resident = [gene_embedding, x2_flat, seg, segT]
    stacked = [params["w_sq"], params["ff_w1"], params["ff_w2"], params["vecs"]]

    in_specs = ([resident_spec(a.shape) for a in resident]
                + [stacked_spec(a.shape) for a in stacked])

    # Explicit VMEM budget: resident set + double-buffered per-stack weights + headroom,
    # clamped to [32 MiB, 64 MiB] so it is legal on v5e/v6e (128 MiB) and v7x (64 MiB).
    per_stack_bytes = sum(int(a.nbytes) // n_stacks for a in stacked)
    resident_bytes = sum(int(a.nbytes) for a in resident) + B * H * 4
    vmem_limit = max(32 << 20,
                     min(64 << 20, 2 * per_stack_bytes + resident_bytes + (4 << 20)))

    return pl.pallas_call(
        kernel,
        out_shape=jax.ShapeDtypeStruct((B, H), jnp.float32),
        grid=(n_stacks,),
        in_specs=in_specs,
        out_specs=resident_spec((B, H)),
        compiler_params=pltpu.CompilerParams(
            dimension_semantics=("arbitrary",),            # sequential stack axis (carried state)
            vmem_limit_bytes=int(vmem_limit)),
    )(*(resident + stacked))


if __name__ == "__main__":
    # small shapes consistent with the module: input_dim == hidden_dim (required by residuals)
    B, S, H, F, heads, n_stacks = 2, 8, 32, 64, 4, 2

    key = jax.random.PRNGKey(0)
    k1, k2, kp = jax.random.split(key, 3)
    gene_embedding = jax.random.normal(k1, (B, H), dtype=jnp.float32)        # (batch, input_dim)
    image_embedding = jax.random.normal(k2, (B, S, H), dtype=jnp.float32)    # (batch, seq, hidden)
    params = init_params(kp, H, F, n_stacks)

    out = stacked_model_forward(gene_embedding, image_embedding, params, heads)
    jax.block_until_ready(out)
    assert out.shape == (B, H) and out.dtype == jnp.float32
    assert bool(jnp.all(jnp.isfinite(out)))
    print("KERNEL_OK")
</pallas_src>

<mosaic_0001>
module attributes {stable_mosaic.version = 11 : i64} {
  func.func @_fused_stack_kernel(%arg0: i32, %arg1: memref<2x32xf32, #tpu.memory_space<vmem>>, %arg2: memref<16x32xbf16, #tpu.memory_space<vmem>>, %arg3: memref<32x4xbf16, #tpu.memory_space<vmem>>, %arg4: memref<4x32xbf16, #tpu.memory_space<vmem>>, %arg5: memref<1x6x32x32xbf16, #tpu.memory_space<vmem>>, %arg6: memref<1x32x64xbf16, #tpu.memory_space<vmem>>, %arg7: memref<1x64x32xbf16, #tpu.memory_space<vmem>>, %arg8: memref<1x11x64xf32, #tpu.memory_space<vmem>>, %arg9: memref<2x32xf32, #tpu.memory_space<vmem>>) attributes {dimension_semantics = [#tpu.dimension_semantics<arbitrary>], iteration_bounds = array<i64: 2>, scalar_prefetch = 0 : i64, scratch_operands = 0 : i64, tpu.core_type = #tpu.core_type<tc>, window_params = [{pipeline_mode = #tpu.pipeline_mode<synchronous>, transform_indices = @transform_0, window_bounds = array<i64: 2, 32>}, {pipeline_mode = #tpu.pipeline_mode<synchronous>, transform_indices = @transform_1, window_bounds = array<i64: 16, 32>}, {pipeline_mode = #tpu.pipeline_mode<synchronous>, transform_indices = @transform_2, window_bounds = array<i64: 32, 4>}, {pipeline_mode = #tpu.pipeline_mode<synchronous>, transform_indices = @transform_3, window_bounds = array<i64: 4, 32>}, {transform_indices = @transform_4, window_bounds = array<i64: 1, 6, 32, 32>}, {transform_indices = @transform_5, window_bounds = array<i64: 1, 32, 64>}, {transform_indices = @transform_6, window_bounds = array<i64: 1, 64, 32>}, {transform_indices = @transform_7, window_bounds = array<i64: 1, 11, 64>}, {pipeline_mode = #tpu.pipeline_mode<synchronous>, transform_indices = @transform_8, window_bounds = array<i64: 2, 32>}]} {
    %c0_i32 = arith.constant 0 : i32
    %0 = arith.cmpi eq, %arg0, %c0_i32 : i32
    %1 = arith.extui %0 : i1 to i32
    %c0_i32_0 = arith.constant 0 : i32
    %2 = arith.cmpi ne, %1, %c0_i32_0 : i32
    scf.if %2 {
      %c0_92 = arith.constant 0 : index
      %c0_93 = arith.constant 0 : index
      %161 = vector.load %arg1[%c0_92, %c0_93] : memref<2x32xf32, #tpu.memory_space<vmem>>, vector<2x32xf32>
      %c0_94 = arith.constant 0 : index
      %c0_95 = arith.constant 0 : index
      %162 = vector.load %arg9[%c0_94, %c0_95] : memref<2x32xf32, #tpu.memory_space<vmem>>, vector<2x32xf32>
      tpu.vector_store %arg9[%c0_94, %c0_95], %161 {strides = array<i32>} : memref<2x32xf32, #tpu.memory_space<vmem>>, vector<2x32xf32>,
    } else {
    }
    %c0 = arith.constant 0 : index
    %c0_1 = arith.constant 0 : index
    %3 = vector.load %arg9[%c0, %c0_1] : memref<2x32xf32, #tpu.memory_space<vmem>>, vector<2x32xf32>
    %c0_2 = arith.constant 0 : index
    %c0_3 = arith.constant 0 : index
    %4 = vector.load %arg2[%c0_2, %c0_3] : memref<16x32xbf16, #tpu.memory_space<vmem>>, vector<16x32xbf16>
    %c0_4 = arith.constant 0 : index
    %c0_5 = arith.constant 0 : index
    %c0_6 = arith.constant 0 : index
    %c0_7 = arith.constant 0 : index
    %5 = vector.load %arg5[%c0_4, %c0_5, %c0_6, %c0_7] : memref<1x6x32x32xbf16, #tpu.memory_space<vmem>>, vector<1x1x32x32xbf16>
    %6 = vector.shape_cast %5 : vector<1x1x32x32xbf16> to vector<32x32xbf16>
    %7 = arith.truncf %3 : vector<2x32xf32> to vector<2x32xbf16>
    %cst = arith.constant dense<0.000000e+00> : vector<2x32xf32>
    %8 = tpu.matmul %7, %6, %cst {dimension_numbers = #tpu.dot_dimension_numbers<[1], [0], [0], [1], [0, 0, 1, 1], [], []>} : vector<2x32xbf16>, vector<32x32xbf16>, vector<2x32xf32> -> vector<2x32xf32>
    %c0_8 = arith.constant 0 : index
    %c0_9 = arith.constant 0 : index
    %c0_10 = arith.constant 0 : index
    %9 = vector.load %arg8[%c0_8, %c0_9, %c0_10] : memref<1x11x64xf32, #tpu.memory_space<vmem>>, vector<1x1x32xf32>
    %10 = vector.shape_cast %9 : vector<1x1x32xf32> to vector<1x32xf32>
    %11 = vector.broadcast %10 : vector<1x32xf32> to vector<2x32xf32>
    %12 = arith.addf %8, %11 : vector<2x32xf32>
    %c0_11 = arith.constant 0 : index
    %c1 = arith.constant 1 : index
    %c0_12 = arith.constant 0 : index
    %c0_13 = arith.constant 0 : index
    %13 = vector.load %arg5[%c0_11, %c1, %c0_12, %c0_13] : memref<1x6x32x32xbf16, #tpu.memory_space<vmem>>, vector<1x1x32x32xbf16>
    %14 = vector.shape_cast %13 : vector<1x1x32x32xbf16> to vector<32x32xbf16>
    %15 = arith.truncf %12 : vector<2x32xf32> to vector<2x32xbf16>
    %cst_14 = arith.constant dense<0.000000e+00> : vector<2x32xf32>
    %16 = tpu.matmul %15, %14, %cst_14 {dimension_numbers = #tpu.dot_dimension_numbers<[1], [0], [0], [1], [0, 0, 1, 1], [], []>} : vector<2x32xbf16>, vector<32x32xbf16>, vector<2x32xf32> -> vector<2x32xf32>
    %c0_15 = arith.constant 0 : index
    %c1_16 = arith.constant 1 : index
    %c0_17 = arith.constant 0 : index
    %17 = vector.load %arg8[%c0_15, %c1_16, %c0_17] : memref<1x11x64xf32, #tpu.memory_space<vmem>>, vector<1x1x32xf32>
    %18 = vector.shape_cast %17 : vector<1x1x32xf32> to vector<1x32xf32>
    %19 = vector.broadcast %18 : vector<1x32xf32> to vector<2x32xf32>
    %20 = arith.addf %16, %19 : vector<2x32xf32>
    %21 = arith.addf %20, %3 : vector<2x32xf32>
    %c0_18 = arith.constant 0 : index
    %c2 = arith.constant 2 : index
    %c0_19 = arith.constant 0 : index
    %22 = vector.load %arg8[%c0_18, %c2, %c0_19] : memref<1x11x64xf32, #tpu.memory_space<vmem>>, vector<1x1x32xf32>
    %23 = vector.shape_cast %22 : vector<1x1x32xf32> to vector<1x32xf32>
    %c0_20 = arith.constant 0 : index
    %c3 = arith.constant 3 : index
    %c0_21 = arith.constant 0 : index
    %24 = vector.load %arg8[%c0_20, %c3, %c0_21] : memref<1x11x64xf32, #tpu.memory_space<vmem>>, vector<1x1x32xf32>
    %25 = vector.shape_cast %24 : vector<1x1x32xf32> to vector<1x32xf32>
    %cst_22 = arith.constant dense<0.000000e+00> : vector<2xf32>
    %26 = vector.multi_reduction <add>, %21, %cst_22 [1] : vector<2x32xf32> to vector<2xf32>
    %27 = vector.shape_cast %26 : vector<2xf32> to vector<2x1xf32>
    %cst_23 = arith.constant 3.200000e+01 : f32
    %28 = vector.broadcast %cst_23 : f32 to vector<2x1xf32>
    %29 = arith.divf %27, %28 : vector<2x1xf32>
    %30 = vector.broadcast %29 : vector<2x1xf32> to vector<2x32xf32>
    %31 = arith.subf %21, %30 : vector<2x32xf32>
    %32 = arith.mulf %31, %31 : vector<2x32xf32>
    %cst_24 = arith.constant dense<0.000000e+00> : vector<2xf32>
    %33 = vector.multi_reduction <add>, %32, %cst_24 [1] : vector<2x32xf32> to vector<2xf32>
    %34 = vector.shape_cast %33 : vector<2xf32> to vector<2x1xf32>
    %cst_25 = arith.constant 3.200000e+01 : f32
    %35 = vector.broadcast %cst_25 : f32 to vector<2x1xf32>
    %36 = arith.divf %34, %35 : vector<2x1xf32>
    %cst_26 = arith.constant 9.99999996E-13 : f32
    %37 = vector.broadcast %cst_26 : f32 to vector<2x1xf32>
    %38 = arith.addf %36, %37 : vector<2x1xf32>
    %39 = math.rsqrt %38 : vector<2x1xf32>
    %40 = vector.broadcast %39 : vector<2x1xf32> to vector<2x32xf32>
    %41 = arith.mulf %31, %40 : vector<2x32xf32>
    %42 = vector.broadcast %23 : vector<1x32xf32> to vector<2x32xf32>
    %43 = arith.mulf %42, %41 : vector<2x32xf32>
    %44 = vector.broadcast %25 : vector<1x32xf32> to vector<2x32xf32>
    %45 = arith.addf %43, %44 : vector<2x32xf32>
    %c0_27 = arith.constant 0 : index
    %c2_28 = arith.constant 2 : index
    %c0_29 = arith.constant 0 : index
    %c0_30 = arith.constant 0 : index
    %46 = vector.load %arg5[%c0_27, %c2_28, %c0_29, %c0_30] : memref<1x6x32x32xbf16, #tpu.memory_space<vmem>>, vector<1x1x32x32xbf16>
    %47 = vector.shape_cast %46 : vector<1x1x32x32xbf16> to vector<32x32xbf16>
    %48 = arith.truncf %45 : vector<2x32xf32> to vector<2x32xbf16>
    %cst_31 = arith.constant dense<0.000000e+00> : vector<2x32xf32>
    %49 = tpu.matmul %48, %47, %cst_31 {dimension_numbers = #tpu.dot_dimension_numbers<[1], [0], [0], [1], [0, 0, 1, 1], [], []>} : vector<2x32xbf16>, vector<32x32xbf16>, vector<2x32xf32> -> vector<2x32xf32>
    %c0_32 = arith.constant 0 : index
    %c3_33 = arith.constant 3 : index
    %c0_34 = arith.constant 0 : index
    %c0_35 = arith.constant 0 : index
    %50 = vector.load %arg5[%c0_32, %c3_33, %c0_34, %c0_35] : memref<1x6x32x32xbf16, #tpu.memory_space<vmem>>, vector<1x1x32x32xbf16>
    %51 = vector.shape_cast %50 : vector<1x1x32x32xbf16> to vector<32x32xbf16>
    %cst_36 = arith.constant dense<0.000000e+00> : vector<16x32xf32>
    %52 = tpu.matmul %4, %51, %cst_36 {dimension_numbers = #tpu.dot_dimension_numbers<[1], [0], [0], [1], [0, 0, 1, 1], [], []>} : vector<16x32xbf16>, vector<32x32xbf16>, vector<16x32xf32> -> vector<16x32xf32>
    %c0_37 = arith.constant 0 : index
    %c4 = arith.constant 4 : index
    %c0_38 = arith.constant 0 : index
    %c0_39 = arith.constant 0 : index
    %53 = vector.load %arg5[%c0_37, %c4, %c0_38, %c0_39] : memref<1x6x32x32xbf16, #tpu.memory_space<vmem>>, vector<1x1x32x32xbf16>
    %54 = vector.shape_cast %53 : vector<1x1x32x32xbf16> to vector<32x32xbf16>
    %cst_40 = arith.constant dense<0.000000e+00> : vector<16x32xf32>
    %55 = tpu.matmul %4, %54, %cst_40 {dimension_numbers = #tpu.dot_dimension_numbers<[1], [0], [0], [1], [0, 0, 1, 1], [], []>} : vector<16x32xbf16>, vector<32x32xbf16>, vector<16x32xf32> -> vector<16x32xf32>
    %56 = vector.shape_cast %49 : vector<2x32xf32> to vector<2x1x32xf32>
    %57 = vector.shape_cast %52 : vector<16x32xf32> to vector<2x8x32xf32>
    %58 = vector.broadcast %56 : vector<2x1x32xf32> to vector<2x8x32xf32>
    %59 = arith.mulf %58, %57 : vector<2x8x32xf32>
    %60 = vector.shape_cast %59 : vector<2x8x32xf32> to vector<16x32xf32>
    %61 = arith.truncf %60 : vector<16x32xf32> to vector<16x32xbf16>
    %c0_41 = arith.constant 0 : index
    %c0_42 = arith.constant 0 : index
    %62 = vector.load %arg3[%c0_41, %c0_42] : memref<32x4xbf16, #tpu.memory_space<vmem>>, vector<32x4xbf16>
    %cst_43 = arith.constant dense<0.000000e+00> : vector<16x4xf32>
    %63 = tpu.matmul %61, %62, %cst_43 {dimension_numbers = #tpu.dot_dimension_numbers<[1], [0], [0], [1], [0, 0, 1, 1], [], []>} : vector<16x32xbf16>, vector<32x4xbf16>, vector<16x4xf32> -> vector<16x4xf32>
    %64 = vector.shape_cast %63 : vector<16x4xf32> to vector<2x8x4xf32>
    %cst_44 = arith.constant 0.353553385 : f32
    %65 = vector.broadcast %cst_44 : f32 to vector<2x8x4xf32>
    %66 = arith.mulf %64, %65 : vector<2x8x4xf32>
    %cst_45 = arith.constant dense<0xFF800000> : vector<2x4xf32>
    %67 = vector.multi_reduction <maximumf>, %66, %cst_45 [1] : vector<2x8x4xf32> to vector<2x4xf32>
    %68 = vector.shape_cast %67 : vector<2x4xf32> to vector<2x1x4xf32>
    %69 = vector.broadcast %68 : vector<2x1x4xf32> to vector<2x8x4xf32>
    %70 = arith.subf %66, %69 : vector<2x8x4xf32>
    %71 = math.exp %70 : vector<2x8x4xf32>
    %cst_46 = arith.constant dense<0.000000e+00> : vector<2x4xf32>
    %72 = vector.multi_reduction <add>, %71, %cst_46 [1] : vector<2x8x4xf32> to vector<2x4xf32>
    %73 = vector.shape_cast %72 : vector<2x4xf32> to vector<2x1x4xf32>
    %74 = tpu.reciprocal %73 {approx = true} : vector<2x1x4xf32> -> vector<2x1x4xf32>
    %75 = vector.broadcast %74 : vector<2x1x4xf32> to vector<2x8x4xf32>
    %76 = arith.mulf %71, %75 : vector<2x8x4xf32>
    %77 = vector.shape_cast %76 : vector<2x8x4xf32> to vector<16x4xf32>
    %78 = arith.truncf %77 : vector<16x4xf32> to vector<16x4xbf16>
    %c0_47 = arith.constant 0 : index
    %c0_48 = arith.constant 0 : index
    %79 = vector.load %arg4[%c0_47, %c0_48] : memref<4x32xbf16, #tpu.memory_space<vmem>>, vector<4x32xbf16>
    %cst_49 = arith.constant dense<0.000000e+00> : vector<16x32xf32>
    %80 = tpu.matmul %78, %79, %cst_49 {dimension_numbers = #tpu.dot_dimension_numbers<[1], [0], [0], [1], [0, 0, 1, 1], [], []>} : vector<16x4xbf16>, vector<4x32xbf16>, vector<16x32xf32> -> vector<16x32xf32>
    %81 = arith.mulf %80, %55 : vector<16x32xf32>
    %82 = vector.shape_cast %81 : vector<16x32xf32> to vector<2x8x32xf32>
    %cst_50 = arith.constant dense<0.000000e+00> : vector<2x32xf32>
    %83 = vector.multi_reduction <add>, %82, %cst_50 [1] : vector<2x8x32xf32> to vector<2x32xf32>
    %c0_51 = arith.constant 0 : index
    %c5 = arith.constant 5 : index
    %c0_52 = arith.constant 0 : index
    %c0_53 = arith.constant 0 : index
    %84 = vector.load %arg5[%c0_51, %c5, %c0_52, %c0_53] : memref<1x6x32x32xbf16, #tpu.memory_space<vmem>>, vector<1x1x32x32xbf16>
    %85 = vector.shape_cast %84 : vector<1x1x32x32xbf16> to vector<32x32xbf16>
    %86 = arith.truncf %83 : vector<2x32xf32> to vector<2x32xbf16>
    %cst_54 = arith.constant dense<0.000000e+00> : vector<2x32xf32>
    %87 = tpu.matmul %86, %85, %cst_54 {dimension_numbers = #tpu.dot_dimension_numbers<[1], [0], [0], [1], [0, 0, 1, 1], [], []>} : vector<2x32xbf16>, vector<32x32xbf16>, vector<2x32xf32> -> vector<2x32xf32>
    %c0_55 = arith.constant 0 : index
    %c4_56 = arith.constant 4 : index
    %c0_57 = arith.constant 0 : index
    %88 = vector.load %arg8[%c0_55, %c4_56, %c0_57] : memref<1x11x64xf32, #tpu.memory_space<vmem>>, vector<1x1x32xf32>
    %89 = vector.shape_cast %88 : vector<1x1x32xf32> to vector<1x32xf32>
    %90 = vector.broadcast %89 : vector<1x32xf32> to vector<2x32xf32>
    %91 = arith.addf %87, %90 : vector<2x32xf32>
    %92 = arith.addf %91, %45 : vector<2x32xf32>
    %c0_58 = arith.constant 0 : index
    %c5_59 = arith.constant 5 : index
    %c0_60 = arith.constant 0 : index
    %93 = vector.load %arg8[%c0_58, %c5_59, %c0_60] : memref<1x11x64xf32, #tpu.memory_space<vmem>>, vector<1x1x32xf32>
    %94 = vector.shape_cast %93 : vector<1x1x32xf32> to vector<1x32xf32>
    %c0_61 = arith.constant 0 : index
    %c6 = arith.constant 6 : index
    %c0_62 = arith.constant 0 : index
    %95 = vector.load %arg8[%c0_61, %c6, %c0_62] : memref<1x11x64xf32, #tpu.memory_space<vmem>>, vector<1x1x32xf32>
    %96 = vector.shape_cast %95 : vector<1x1x32xf32> to vector<1x32xf32>
    %cst_63 = arith.constant dense<0.000000e+00> : vector<2xf32>
    %97 = vector.multi_reduction <add>, %92, %cst_63 [1] : vector<2x32xf32> to vector<2xf32>
    %98 = vector.shape_cast %97 : vector<2xf32> to vector<2x1xf32>
    %cst_64 = arith.constant 3.200000e+01 : f32
    %99 = vector.broadcast %cst_64 : f32 to vector<2x1xf32>
    %100 = arith.divf %98, %99 : vector<2x1xf32>
    %101 = vector.broadcast %100 : vector<2x1xf32> to vector<2x32xf32>
    %102 = arith.subf %92, %101 : vector<2x32xf32>
    %103 = arith.mulf %102, %102 : vector<2x32xf32>
    %cst_65 = arith.constant dense<0.000000e+00> : vector<2xf32>
    %104 = vector.multi_reduction <add>, %103, %cst_65 [1] : vector<2x32xf32> to vector<2xf32>
    %105 = vector.shape_cast %104 : vector<2xf32> to vector<2x1xf32>
    %cst_66 = arith.constant 3.200000e+01 : f32
    %106 = vector.broadcast %cst_66 : f32 to vector<2x1xf32>
    %107 = arith.divf %105, %106 : vector<2x1xf32>
    %cst_67 = arith.constant 9.99999974E-6 : f32
    %108 = vector.broadcast %cst_67 : f32 to vector<2x1xf32>
    %109 = arith.addf %107, %108 : vector<2x1xf32>
    %110 = math.rsqrt %109 : vector<2x1xf32>
    %111 = vector.broadcast %110 : vector<2x1xf32> to vector<2x32xf32>
    %112 = arith.mulf %102, %111 : vector<2x32xf32>
    %113 = vector.broadcast %94 : vector<1x32xf32> to vector<2x32xf32>
    %114 = arith.mulf %113, %112 : vector<2x32xf32>
    %115 = vector.broadcast %96 : vector<1x32xf32> to vector<2x32xf32>
    %116 = arith.addf %114, %115 : vector<2x32xf32>
    %c0_68 = arith.constant 0 : index
    %c0_69 = arith.constant 0 : index
    %c0_70 = arith.constant 0 : index
    %117 = vector.load %arg6[%c0_68, %c0_69, %c0_70] : memref<1x32x64xbf16, #tpu.memory_space<vmem>>, vector<1x32x64xbf16>
    %118 = vector.shape_cast %117 : vector<1x32x64xbf16> to vector<32x64xbf16>
    %119 = arith.truncf %116 : vector<2x32xf32> to vector<2x32xbf16>
    %cst_71 = arith.constant dense<0.000000e+00> : vector<2x64xf32>
    %120 = tpu.matmul %119, %118, %cst_71 {dimension_numbers = #tpu.dot_dimension_numbers<[1], [0], [0], [1], [0, 0, 1, 1], [], []>} : vector<2x32xbf16>, vector<32x64xbf16>, vector<2x64xf32> -> vector<2x64xf32>
    %c0_72 = arith.constant 0 : index
    %c7 = arith.constant 7 : index
    %c0_73 = arith.constant 0 : index
    %121 = vector.load %arg8[%c0_72, %c7, %c0_73] : memref<1x11x64xf32, #tpu.memory_space<vmem>>, vector<1x1x64xf32>
    %122 = vector.shape_cast %121 : vector<1x1x64xf32> to vector<1x64xf32>
    %123 = vector.broadcast %122 : vector<1x64xf32> to vector<2x64xf32>
    %124 = arith.addf %120, %123 : vector<2x64xf32>
    %cst_74 = arith.constant 0.000000e+00 : f32
    %125 = vector.broadcast %cst_74 : f32 to vector<2x64xf32>
    %126 = arith.maximumf %124, %125 : vector<2x64xf32>
    %c0_75 = arith.constant 0 : index
    %c0_76 = arith.constant 0 : index
    %c0_77 = arith.constant 0 : index
    %127 = vector.load %arg7[%c0_75, %c0_76, %c0_77] : memref<1x64x32xbf16, #tpu.memory_space<vmem>>, vector<1x64x32xbf16>
    %128 = vector.shape_cast %127 : vector<1x64x32xbf16> to vector<64x32xbf16>
    %129 = arith.truncf %126 : vector<2x64xf32> to vector<2x64xbf16>
    %cst_78 = arith.constant dense<0.000000e+00> : vector<2x32xf32>
    %130 = tpu.matmul %129, %128, %cst_78 {dimension_numbers = #tpu.dot_dimension_numbers<[1], [0], [0], [1], [0, 0, 1, 1], [], []>} : vector<2x64xbf16>, vector<64x32xbf16>, vector<2x32xf32> -> vector<2x32xf32>
    %c0_79 = arith.constant 0 : index
    %c8 = arith.constant 8 : index
    %c0_80 = arith.constant 0 : index
    %131 = vector.load %arg8[%c0_79, %c8, %c0_80] : memref<1x11x64xf32, #tpu.memory_space<vmem>>, vector<1x1x32xf32>
    %132 = vector.shape_cast %131 : vector<1x1x32xf32> to vector<1x32xf32>
    %133 = vector.broadcast %132 : vector<1x32xf32> to vector<2x32xf32>
    %134 = arith.addf %130, %133 : vector<2x32xf32>
    %135 = arith.addf %116, %134 : vector<2x32xf32>
    %c0_81 = arith.constant 0 : index
    %c9 = arith.constant 9 : index
    %c0_82 = arith.constant 0 : index
    %136 = vector.load %arg8[%c0_81, %c9, %c0_82] : memref<1x11x64xf32, #tpu.memory_space<vmem>>, vector<1x1x32xf32>
    %137 = vector.shape_cast %136 : vector<1x1x32xf32> to vector<1x32xf32>
    %c0_83 = arith.constant 0 : index
    %c10 = arith.constant 10 : index
    %c0_84 = arith.constant 0 : index
    %138 = vector.load %arg8[%c0_83, %c10, %c0_84] : memref<1x11x64xf32, #tpu.memory_space<vmem>>, vector<1x1x32xf32>
    %139 = vector.shape_cast %138 : vector<1x1x32xf32> to vector<1x32xf32>
    %cst_85 = arith.constant dense<0.000000e+00> : vector<2xf32>
    %140 = vector.multi_reduction <add>, %135, %cst_85 [1] : vector<2x32xf32> to vector<2xf32>
    %141 = vector.shape_cast %140 : vector<2xf32> to vector<2x1xf32>
    %cst_86 = arith.constant 3.200000e+01 : f32
    %142 = vector.broadcast %cst_86 : f32 to vector<2x1xf32>
    %143 = arith.divf %141, %142 : vector<2x1xf32>
    %144 = vector.broadcast %143 : vector<2x1xf32> to vector<2x32xf32>
    %145 = arith.subf %135, %144 : vector<2x32xf32>
    %146 = arith.mulf %145, %145 : vector<2x32xf32>
    %cst_87 = arith.constant dense<0.000000e+00> : vector<2xf32>
    %147 = vector.multi_reduction <add>, %146, %cst_87 [1] : vector<2x32xf32> to vector<2xf32>
    %148 = vector.shape_cast %147 : vector<2xf32> to vector<2x1xf32>
    %cst_88 = arith.constant 3.200000e+01 : f32
    %149 = vector.broadcast %cst_88 : f32 to vector<2x1xf32>
    %150 = arith.divf %148, %149 : vector<2x1xf32>
    %cst_89 = arith.constant 9.99999974E-6 : f32
    %151 = vector.broadcast %cst_89 : f32 to vector<2x1xf32>
    %152 = arith.addf %150, %151 : vector<2x1xf32>
    %153 = math.rsqrt %152 : vector<2x1xf32>
    %154 = vector.broadcast %153 : vector<2x1xf32> to vector<2x32xf32>
    %155 = arith.mulf %145, %154 : vector<2x32xf32>
    %156 = vector.broadcast %137 : vector<1x32xf32> to vector<2x32xf32>
    %157 = arith.mulf %156, %155 : vector<2x32xf32>
    %158 = vector.broadcast %139 : vector<1x32xf32> to vector<2x32xf32>
    %159 = arith.addf %157, %158 : vector<2x32xf32>
    %c0_90 = arith.constant 0 : index
    %c0_91 = arith.constant 0 : index
    %160 = vector.load %arg9[%c0_90, %c0_91] : memref<2x32xf32, #tpu.memory_space<vmem>>, vector<2x32xf32>
    tpu.vector_store %arg9[%c0_90, %c0_91], %159 {strides = array<i32>} : memref<2x32xf32, #tpu.memory_space<vmem>>, vector<2x32xf32>,
    return
  }
  func.func @transform_0(%arg0: i32) -> (i32, i32) {
    %c0_i32 = arith.constant 0 : i32
    %c0_i32_0 = arith.constant 0 : i32
    %c0_i32_1 = arith.constant 0 : i32
    return %c0_i32, %c0_i32_0 : i32, i32
  }
  func.func @transform_1(%arg0: i32) -> (i32, i32) {
    %c0_i32 = arith.constant 0 : i32
    %c0_i32_0 = arith.constant 0 : i32
    %c0_i32_1 = arith.constant 0 : i32
    return %c0_i32, %c0_i32_0 : i32, i32
  }
  func.func @transform_2(%arg0: i32) -> (i32, i32) {
    %c0_i32 = arith.constant 0 : i32
    %c0_i32_0 = arith.constant 0 : i32
    %c0_i32_1 = arith.constant 0 : i32
    return %c0_i32, %c0_i32_0 : i32, i32
  }
  func.func @transform_3(%arg0: i32) -> (i32, i32) {
    %c0_i32 = arith.constant 0 : i32
    %c0_i32_0 = arith.constant 0 : i32
    %c0_i32_1 = arith.constant 0 : i32
    return %c0_i32, %c0_i32_0 : i32, i32
  }
  func.func @transform_4(%arg0: i32) -> (i32, i32, i32, i32) {
    %c0_i32 = arith.constant 0 : i32
    %c0_i32_0 = arith.constant 0 : i32
    %c0_i32_1 = arith.constant 0 : i32
    %c0_i32_2 = arith.constant 0 : i32
    return %arg0, %c0_i32, %c0_i32_0, %c0_i32_1 : i32, i32, i32, i32
  }
  func.func @transform_5(%arg0: i32) -> (i32, i32, i32) {
    %c0_i32 = arith.constant 0 : i32
    %c0_i32_0 = arith.constant 0 : i32
    %c0_i32_1 = arith.constant 0 : i32
    return %arg0, %c0_i32, %c0_i32_0 : i32, i32, i32
  }
  func.func @transform_6(%arg0: i32) -> (i32, i32, i32) {
    %c0_i32 = arith.constant 0 : i32
    %c0_i32_0 = arith.constant 0 : i32
    %c0_i32_1 = arith.constant 0 : i32
    return %arg0, %c0_i32, %c0_i32_0 : i32, i32, i32
  }
  func.func @transform_7(%arg0: i32) -> (i32, i32, i32) {
    %c0_i32 = arith.constant 0 : i32
    %c0_i32_0 = arith.constant 0 : i32
    %c0_i32_1 = arith.constant 0 : i32
    return %arg0, %c0_i32, %c0_i32_0 : i32, i32, i32
  }
  func.func @transform_8(%arg0: i32) -> (i32, i32) {
    %c0_i32 = arith.constant 0 : i32
    %c0_i32_0 = arith.constant 0 : i32
    %c0_i32_1 = arith.constant 0 : i32
    return %c0_i32, %c0_i32_0 : i32, i32
  }
}

</mosaic_0001>

<bundles_post_ra>
// kernel: tpu_custom_call.1
= control target key start
LH: loop header
LB: loop body
LE: loop exit
PB: predicated region body
PF: predicated region fallthrough
CT: control target
= control target key end

     0   :  { %13 = vsyncpa [#allocation3], 0  ;;  %s1574_s0 = inlined_call_operand.vmem [shape: f32[2,32], index: 0, kind: input, shape index: {}]   ;;  %s1575_s1 = inlined_call_operand.vmem [shape: bf16[16,32], index: 1, kind: input, shape index: {}]   ;;  %s1576_s2 = inlined_call_operand.vmem [shape: bf16[32,4], index: 2, kind: input, shape index: {}]   ;;  %s1577_s3 = inlined_call_operand.vmem [shape: bf16[4,32], index: 3, kind: input, shape index: {}]   ;;  %s1578_s4 = inlined_call_operand.hbm [shape: bf16[2,6,32,32], index: 4, kind: input, shape index: {}]   ;;  %s1579_s5 = inlined_call_operand.vmem [shape: bf16[2,32,64], index: 5, kind: input, shape index: {}]   ;;  %s1580_s6 = inlined_call_operand.vmem [shape: bf16[2,64,32], index: 6, kind: input, shape index: {}]   ;;  %s1581_s7 = inlined_call_operand.vmem [shape: f32[2,11,64], index: 7, kind: input, shape index: {}]   ;;  %s1582_s8 = inlined_call_operand.hbm [shape: f32[2,32], index: 8, kind: output, shape index: {}]  }
   0x1   :  { %15 = vsyncpa [#allocation3 + $0x1], 0 }
   0x2   :  { %16 = vsyncpa [#allocation4], 0  ;;  %s1386_s27 = smov 0   ;;  %s1388_s28 = smov 0  }
   0x3   :  { %s1390_s29 = smov 0   ;;  %s1392_s30 = smov 0  }
   0x4 LB: > { %s1405_s9 = sadd.s32 4294967295, %s1335_s30   ;;  %s1408_s10 = sadd.s32 1, %s1335_s30   ;;  %s1335_s30 = sphi %s1392_s30, %s1588_s30   ;;  %s1331_s29 = sphi %s1390_s29, %s1587_s29   ;;  %s1327_s28 = sphi %s1388_s28, %s1586_s28   ;;  %s1323_s27 = sphi %s1386_s27, %s1585_s27  }
   0x5   : > { %s110_s11 = ssub.s32 %s1335_s30, %s1408_s10  ;;  %s113_s12 = sadd.s32 1, %s1331_s29 }
   0x6   : > { %p111_p0 = scmp.eq.s32.totalorder %s110_s11, 0  ;;  %p120_p1 = scmp.ne.s32.totalorder %s1331_s29, %s1327_s28 }
   0x7   : > { %p121_p2 = scmp.eq.s32.totalorder %s1335_s30, 0  ;;  %p126_p3 = scmp.ne.s32.totalorder %s1327_s28, %s1323_s27 }
   0x8   : > { %s1418_s13 = scalar_select %p111_p0, %s1331_s29, %s113_s12  }
   0x9   : > { %p122_p4 = por %p121_p2, %p120_p1  ;;  %p127_p5 = scmp.eq.s32.totalorder %s1405_s9, 0 }
   0xa   : > { %p1173_p6 = scmp.lt.s32.totalorder %s1335_s30, 2  ;;  %s261_s15 = sand.u32 1, %s1331_s29  }
   0xb   : > { %p1422_p7 = por %p127_p5, %p126_p3  ;;  %s1160_s16 = smul.u32 96, %s261_s15 }
   0xc   : > { %s1161_s17 = smul.u32 96, %s1335_s30  ;;  %p1428_p8 = pnand %p1173_p6, %p122_p4 }
   0xd   : > { %s265_s22 = scalar_lea.vmem [#allocation2], %s1160_s16  ;;  %p1010_p9 = scmp.ge.s32.totalorder %s1335_s30, 1 }
   0xe   : > { %s270_s21 = scalar_lea.hbm %s1578_s4, %s1161_s17  ;;  %s273_s23 = sshll.u32 %s265_s22, 4  ;;  %s274_s23 = int_to_ptr.vmem [resolvable:$true] %s273_s23 }
   0xf   : > { %s271_s24 = sshll.u32 %s270_s21, 4  ;;  %s262_s25 = scalar_lea.sflag [#allocation3], %s261_s15  ;;  %s272_s24 = int_to_ptr.hbm [resolvable:$true] %s271_s24 }
  0x10   : > { %s1239_s26 = sshra.s32 %s272_s24, 4  ;;  %p1243_p11 = pneg %p1428_p8  ;;  %s1240_s26 = int_to_ptr.hbm [resolvable:$true] %s1239_s26 }
  0x11   : > { %s1241_s27 = scalar_lea.hbm %s1240_s26, 96  ;;  %s1246_s19 = scalar_lea.hbm %s1578_s4, 192 }
  0x12   : > { %p1242_p10 = scmp.ne.s32.totalorder %s1240_s26, %s1241_s27  ;;  %p1247_p0 = scmp.lt.s32.totalorder %s1240_s26, %s1578_s4 }
  0x13   : > { %p1248_p1 = scmp.lt.s32.totalorder %s1246_s19, %s1241_s27 }
  0x14   : > { %p1244_p12 = pnand %p1243_p11, %p1242_p10 }
  0x15   : > { %p1249_p2 = por %p1248_p1, %p1247_p0 }
  0x16   : > { %p1245_p13 = pneg %p1244_p12 }
  0x18   : > { %p1250_p3 = pnand %p1249_p2, %p1245_p13 }
  0x1a   : > { %1253 = shalt.err (!%p1250_p3)
}
  0x1b   : > { %s1337_s15 = smov 64   ;;  %s1338_s20 = smov 4  }
  0x1c   : > { %1172 = dma.hbm_to_vmem [thread:$0]  (!%p1428_p8), %s272_s24, 1536, %s274_s23, %s262_s25, %s1337_s15, %s1337_s15, %s1338_s20  }
  0x1d   : > { %p305_p4 = scmp.lt.s32.totalorder %s1335_s30, 3 }
  0x1f   : > { %p306_p5 = pnand %p1010_p9, %p305_p4 }
  0x20   : > { %s311_s21 = sand.u32 (!%p306_p5), 1, %s1327_s28  }
  0x21   : > { %309 = sbr.rel (%p306_p5) target bundleno = 2014 (0x7de), region = 52  ;;  %s312_s26 = scalar_lea.sflag (!%p306_p5), [#allocation3], %s311_s21 }
  0x22   : > { %s1162_s22 = smul.u32 (!%p306_p5), 96, %s311_s21 }
  0x24   : > { %s1450_s27 = scalar_lea.vmem (!%p306_p5), [#allocation2], %s1162_s22 }
  0x26   : > { %1314 = dma.done.wait (%p1422_p7), %s312_s26, 1536  }
  0x27   : > { %1316 = vsyncadd (%p1422_p7), %s312_s26, 4294965760  ;;  %p359_p6 = scmp.lt.s32.totalorder %s1405_s9, 1  ;;  %p1017_p7 = scmp.ne.s32.totalorder %s1405_s9, 0 }
  0x29   : > { %s360_s18 = scalar_select %p359_p6, %s1405_s9, 1 }
  0x2a   : > { %378 = sbr.rel (%p1017_p7) target bundleno = 49 (0x31), region = 60 }
  0x2b   : > { %s1136_s23 = sshll.u32 %s360_s18, 4  ;;  %s1137_s30 = sshll.u32 %s360_s18, 5 }
  0x2c   : > { %s1461_s11 = scalar_lea.vmem %s1579_s5, %s1136_s23  ;;  %s1466_s17 = scalar_lea.vmem %s1580_s6, %s1137_s30 }
  0x2d   : > { %s1471_s14 = scalar_lea.vmem %s1581_s7, %s1136_s23 }
  0x2f   : > { %v379_v0 = vld [vmem:[%s1574_s0] sm:$0x3]  ;;  %vm380_vm0 = vcmask 254976  }
  0x30   : > { %381 = vst.msk [vmem:[#allocation5] sm:$0x3] %vm380_vm0, %v379_v0 }
  0x31 PF: > { %v1141_v1 = vld [vmem:[%s1450_s27 + $0x8] sm:$0xff]  ;;  %v1140_v2 = vld [vmem:[%s1450_s27] sm:$0xff]  ;;  %v1143_v4 = vld [vmem:[%s1450_s27 + $0x18] sm:$0xff]  ;;  %vm404_vm1 = vcmask 261120   ;;  %vm460_vm2 = vcmask 254976   ;;  %v1339_v18 = vmov 32.0  }
  0x32   : > { %414 = vmatpush.bf16.msra.mxu0 %v1141_v1  ;;  %450 = vmatpush.bf16.msra.mxu1 %v1143_v4  ;;  %v1142_v6 = vld [vmem:[%s1450_s27 + $0x10] sm:$0xff]  ;;  %v1212_v7 = vld [vmem:[%s1471_s14] ss:$0 sm:$0xff]  ;;  %v1213_v12 = vld [vmem:[%s1471_s14 + $0x1] ss:$0 sm:$0xff]  ;;  %1223 = vrcp.f32 %v1339_v18  ;;  %vm642_vm7 = vcmask 31744  }
  0x33   : > { %v1147_v30 = vld [vmem:[%s1450_s27 + $0x38] sm:$0xff]  ;;  %v1146_v31 = vld [vmem:[%s1450_s27 + $0x30] sm:$0xff]  ;;  %v1495_v32 = vld [vmem:[%s1575_s1] sm:$0xff]  ;;  %vm686_vm8 = vcmask 1041408   ;;  %vm733_vm9 = vcmask 1041409   ;;  %vm864_vm13 = vcmask 523264  }
  0x34   : > { %559 = vmatpush.bf16.msra.mxu3 %v1147_v30  ;;  %v1145_v33 = vld [vmem:[%s1450_s27 + $0x28] sm:$0xff]  ;;  %v1144_v34 = vld [vmem:[%s1450_s27 + $0x20] sm:$0xff]  ;;  %s919_s16 = sshll.u32 %s1582_s8, 4  ;;  %p1174_p8 = scmp.eq.s32.totalorder %s1405_s9, 1  ;;  %s920_s16 = int_to_ptr.hbm [resolvable:$true] %s919_s16 }
  0x35   : > { %521 = vmatpush.bf16.msra.mxu2 %v1145_v33  ;;  %v1214_v44 = vld [vmem:[%s1471_s14 + $0x2] ss:$0 sm:$0xff]  ;;  %v1215_v47 = vld [vmem:[%s1471_s14 + $0x3] ss:$0 sm:$0xff]  ;;  %v1151_v51 = vld [vmem:[%s1576_s2 + $0x8] sm:$0xff] }
  0x36   : > { %415 = vmatpush.bf16.msra.mxu0 %v1140_v2  ;;  %451 = vmatpush.bf16.msra.mxu1 %v1142_v6  ;;  %v1150_v52 = vld [vmem:[%s1576_s2] sm:$0xff] }
  0x37   : > { %v382_v3 = vld [vmem:[#allocation5] sm:$0x3] }
  0x38   : > { %v389_v5 = vpack.c.bf16 %v382_v3, %v382_v3  ;;  %v1224_v19 = vpop.eup %1223  ;;  %560 = vmatpush.bf16.msra.mxu3 %v1146_v31 }
  0x39   : > { %v465_v20 = vmul.f32 32.0, %v1224_v19  ;;  %vm469_vm3 = vweird.f32 %v1224_v19  ;;  %522 = vmatpush.bf16.msra.mxu2 %v1144_v34 }
  0x3a   : > { %1026 = vmatmul.msk.bf16.vlgmr.msra.gmra.mxu0 %vm404_vm1, %v389_v5  ;;  %632 = vmatpush.bf16.msrb.mxu1 %v1151_v51 }
  0x3b   : > { %v466_v21 = vsub.f32 1.0, %v465_v20  ;;  %1069 = vmatmul.msk.bf16.vlgmr.msra.gmra.mxu3 %vm404_vm1, %v1495_v32  ;;  %v1148_v20 = vld [vmem:[%s1450_s27 + $0x40] sm:$0xff] }
  0x3d   : > { %v467_v22 = vmul.f32 %v1224_v19, %v466_v21 }
  0x3e   : > { %633 = vmatpush.bf16.msrb.mxu1 %v1150_v52 }
  0x3f   : > { %v468_v23 = vadd.f32 %v1224_v19, %v467_v22 }
  0x41   : > { %v1486_v24 = vsel %vm469_vm3, %v1224_v19, %v468_v23 }
  0xb7   : > { %v417_v8 = vpop.f32.mrf.mxu0 }
  0xb8   : > { %v418_v9 = vadd.f32 %v1212_v7, %v417_v8 }
  0xba   : > { %v426_v10 = vpack.c.bf16 %v418_v9, %v418_v9 }
  0xbc   : > { %1039 = vmatmul.msk.bf16.vlgmr.msra.gmra.mxu1 %vm404_vm1, %v426_v10 }
  0xbe   : > { %v562_v53 = vpop.f32.mrf.mxu3 }
  0xbf   : > { %v419_v11 = vpop.f32.mrf.mxu0 }
  0xc6   : > { %v564_v58 = vpop.f32.mrf.mxu3 }
 0x139   : > { %v453_v13 = vpop.f32.mrf.mxu1 }
 0x13a   : > { %v454_v14 = vadd.f32 %v1213_v12, %v453_v13 }
 0x13c   : > { %v457_v15 = vadd.f32 %v454_v14, %v382_v3 }
 0x13e   : > { %v461_v16 = vsel %vm460_vm2, %v457_v15, 0.0 }
 0x13f   : > { %462 = vadd.xlane.f32.xlu0 %v461_v16  ;;  %v1149_v16 = vld [vmem:[%s1450_s27 + $0x48] sm:$0xff] }
 0x140   : > { %590 = vmatpush.bf16.msrb.mxu0 %v1149_v16 }
 0x141   : > { %v455_v17 = vpop.f32.mrf.mxu1 }
 0x144   : > { %591 = vmatpush.bf16.msrb.mxu0 %v1148_v20 }
 0x147   : > { %1082 = vmatmul.msk.bf16.vlgmr.msrb.gmra.mxu0 %vm404_vm1, %v1495_v32 }
 0x1b2   : > { %v463_v25 = vpop.xlane.xlu0 %462 }
 0x1b3   : > { %v471_v26 = vmul.f32 %v1486_v24, %v463_v25 }
 0x1b5   : > { %v472_v27 = vsub.f32 %v457_v15, %v471_v26  ;;  %v682_v15 = vld [vmem:[%s1577_s3] sm:$0x3] }
 0x1b6   : > { %v688_v17 = vsel %vm686_vm8, %v682_v15, 0 }
 0x1b7   : > { %v473_v28 = vmul.f32 %v472_v27, %v472_v27  ;;  %697 = vmatpush.bf16.msrb.mxu2 %v688_v17 }
 0x1b9   : > { %v474_v29 = vsel %vm460_vm2, %v473_v28, 0.0 }
 0x1ba   : > { %475 = vadd.xlane.f32.xlu0 %v474_v29 }
 0x22d   : > { %v476_v35 = vpop.xlane.xlu0 %475 }
 0x22e   : > { %v477_v36 = vmul.f32 %v476_v35, %v1486_v24 }
 0x230   : > { %v478_v37 = vadd.f32 1e-12, %v477_v36 }
 0x232   : > { %1225 = vrsqrt.f32 %v478_v37  ;;  %vm485_vm5 = vweird.f32 %v478_v37 }
 0x238   : > { %v1226_v38 = vpop.eup %1225 }
 0x239   : > { %v480_v39 = vmul.f32 %v1226_v38, %v478_v37  ;;  %vm486_vm4 = vweird.f32 %v1226_v38 }
 0x23a   : > { %vm487_vm6 = vmor %vm485_vm5, %vm486_vm4 }
 0x23b   : > { %v481_v40 = vmul.f32 %v1226_v38, %v480_v39 }
 0x23d   : > { %v482_v41 = vmul.f32 0.5, %v481_v40 }
 0x23f   : > { %v483_v42 = vsub.f32 1.5, %v482_v41 }
 0x241   : > { %v484_v43 = vmul.f32 %v1226_v38, %v483_v42 }
 0x243   : > { %v488_v45 = vsel %vm487_vm6, %v1226_v38, %v484_v43 }
 0x244   : > { %v489_v46 = vmul.f32 %v488_v45, %v472_v27 }
 0x246   : > { %v491_v48 = vmul.f32 %v1214_v44, %v489_v46 }
 0x248   : > { %v1504_v49 = vadd.f32 %v1215_v47, %v491_v48  ;;  %v1153_v47 = vld [vmem:[%s1450_s27 + $0x58] sm:$0xff]  ;;  %v1152_v48 = vld [vmem:[%s1450_s27 + $0x50] sm:$0xff]  ;;  %s1340_s27 = smov [#allocation5]  }
 0x249   : > { %757 = vmatpush.bf16.msrb.mxu3 %v1153_v47 }
 0x24a   : > { %v499_v50 = vpack.c.bf16 %v1504_v49, %v1504_v49 }
 0x24c   : > { %1052 = vmatmul.msk.bf16.vlgmr.msra.gmra.mxu2 %vm404_vm1, %v499_v50  ;;  %v593_v50 = vpop.f32.mrf.mxu0 }
 0x24d   : > { %758 = vmatpush.bf16.msrb.mxu3 %v1152_v48 }
 0x2cf   : > { %v524_v54 = vpop.f32.mrf.mxu2 }
 0x2d0   : > { %v599_v55 = vrot.slane %v524_v54, 1  ;;  %v600_v56 = vperm.slane %v524_v54, 0 }
 0x2d2   : > { %v601_v57 = vperm.slane %v599_v55, 0  ;;  %v604_v59 = vmul.f32 %v600_v56, %v562_v53  ;;  %v595_v56 = vpop.f32.mrf.mxu0 }
 0x2d4   : > { %v605_v60 = vmul.f32 %v601_v57, %v564_v58 }
 0x2d6   : > { %v606_v61 = vpack.c.bf16 %v605_v60, %v604_v59 }
 0x2d7   : > { %v526_v62 = vpop.f32.mrf.mxu2 }
 0x2d8   : > { %1091 = vmatmul.msk.bf16.vlgmr.msrb.gmra.mxu1 %vm404_vm1, %v606_v61 }
 0x355   : > { %v635_v63 = vpop.f32.mrf.mxu1 }
 0x356   : > { %v640_v0 = vmul.f32 0.35355338, %v635_v63 }
 0x358   : > { %v643_v1 = vsel %vm642_vm7, %v640_v0, -inf }
 0x359   : > { %v644_v2 = vrot.slane %v643_v1, 4 }
 0x35b   : > { %v645_v3 = vmax.f32 %v643_v1, %v644_v2 }
 0x35d   : > { %v646_v4 = vrot.slane %v645_v3, 2  ;;  %v637_v5 = vpop.f32.mrf.mxu1 }
 0x35e   : > { %v641_v6 = vmul.f32 0.35355338, %v637_v5 }
 0x35f   : > { %v647_v7 = vmax.f32 %v645_v3, %v646_v4 }
 0x360   : > { %v650_v8 = vsel %vm642_vm7, %v641_v6, -inf }
 0x361   : > { %v648_v9 = vrot.slane %v647_v7, 1  ;;  %v651_v10 = vrot.slane %v650_v8, 4 }
 0x363   : > { %v649_v11 = vmax.f32 %v647_v7, %v648_v9  ;;  %v652_v12 = vmax.f32 %v650_v8, %v651_v10 }
 0x365   : > { %v657_v13 = vsub.f32 %v640_v0, %v649_v11  ;;  %v653_v14 = vrot.slane %v652_v12, 2 }
 0x367   : > { %v659_v18 = vmul.f32 1.442695, %v657_v13  ;;  %v654_v19 = vmax.f32 %v652_v12, %v653_v14  ;;  %v1216_v12 = vld [vmem:[%s1471_s14 + $0x4] ss:$0 sm:$0xff] }
 0x369   : > { %1227 = vpow2.f32 %v659_v18  ;;  %v655_v21 = vrot.slane %v654_v19, 1 }
 0x36b   : > { %v656_v22 = vmax.f32 %v654_v19, %v655_v21 }
 0x36d   : > { %v658_v23 = vsub.f32 %v641_v6, %v656_v22 }
 0x36f   : > { %v1228_v25 = vpop.eup %1227  ;;  %v661_v26 = vmul.f32 1.442695, %v658_v23  ;;  %v1155_v23 = vld [vmem:[%s1461_s11 + $0x8] sm:$0xff] }
 0x370   : > { %v663_v27 = vsel %vm642_vm7, %v1228_v25, 0.0  ;;  %821 = vmatpush.bf16.msra.mxu0 %v1155_v23 }
 0x371   : > { %v664_v28 = vrot.slane %v663_v27, 4  ;;  %1229 = vpow2.f32 %v661_v26  ;;  %v1159_v26 = vld [vmem:[%s1466_s17 + $0x18] sm:$0xff] }
 0x372   : > { %872 = vmatpush.bf16.msra.mxu1 %v1159_v26 }
 0x373   : > { %v665_v29 = vadd.f32 %v664_v28, %v663_v27  ;;  %v1158_v28 = vld [vmem:[%s1466_s17 + $0x10] sm:$0xff] }
 0x375   : > { %v666_v30 = vrot.slane %v665_v29, 2 }
 0x376   : > { %873 = vmatpush.bf16.msra.mxu1 %v1158_v28 }
 0x377   : > { %v1230_v31 = vpop.eup %1229  ;;  %v667_v33 = vadd.f32 %v666_v30, %v665_v29  ;;  %v1157_v30 = vld [vmem:[%s1466_s17 + $0x8] sm:$0xff] }
 0x378   : > { %v670_v34 = vsel %vm642_vm7, %v1230_v31, 0.0 }
 0x379   : > { %v671_v35 = vrot.slane %v670_v34, 4  ;;  %v668_v36 = vrot.slane %v667_v33, 1 }
 0x37a   : > { %874 = vmatpush.bf16.msra.mxu1 %v1157_v30 }
 0x37b   : > { %v672_v37 = vadd.f32 %v671_v35, %v670_v34  ;;  %v669_v39 = vadd.f32 %v668_v36, %v667_v33 }
 0x37d   : > { %v673_v38 = vrot.slane %v672_v37, 2  ;;  %1231 = vrcp.f32 %v669_v39 }
 0x37f   : > { %v674_v32 = vadd.f32 %v673_v38, %v672_v37  ;;  %v1217_v38 = vld [vmem:[%s1471_s14 + $0x5] ss:$0 sm:$0xff] }
 0x381   : > { %v675_v40 = vrot.slane %v674_v32, 1 }
 0x383   : > { %v676_v41 = vadd.f32 %v675_v40, %v674_v32  ;;  %v1232_v42 = vpop.eup %1231  ;;  %v1218_v32 = vld [vmem:[%s1471_s14 + $0x6] ss:$0 sm:$0xff] }
 0x384   : > { %v679_v44 = vmul.f32 %v1232_v42, %v1228_v25  ;;  %v1154_v25 = vld [vmem:[%s1461_s11] sm:$0xff]  ;;  %s917_s11 = sshll.u32 %s1340_s27, 4  ;;  %s918_s11 = int_to_ptr.vmem [resolvable:$true] %s917_s11 }
 0x385   : > { %1233 = vrcp.f32 %v676_v41  ;;  %822 = vmatpush.bf16.msra.mxu0 %v1154_v25 }
 0x38b   : > { %v1234_v43 = vpop.eup %1233 }
 0x38c   : > { %v680_v45 = vmul.f32 %v1234_v43, %v1230_v31 }
 0x38e   : > { %v681_v46 = vpack.c.bf16 %v680_v45, %v679_v44  ;;  %v1156_v44 = vld [vmem:[%s1466_s17] sm:$0xff] }
 0x38f   : > { %875 = vmatpush.bf16.msra.mxu1 %v1156_v44  ;;  %v1219_v45 = vld [vmem:[%s1471_s14 + $0x7] ss:$0 sm:$0xff] }
 0x390   : > { %1092 = vmatmul.msk.bf16.vlgmr.msrb.gmra.mxu2 %vm642_vm7, %v681_v46 }
 0x413   : > { %v699_v51 = vpop.f32.mrf.mxu2 }
 0x414   : > { %v704_v52 = vmul.f32 %v699_v51, %v593_v50 }
 0x416   : > { %v706_v53 = vsel %vm404_vm1, %v704_v52, 0.0  ;;  %v1220_v52 = vld [vmem:[%s1471_s14 + $0x8] ss:$0 sm:$0xff] }
 0x417   : > { %v707_v54 = vrot.slane %v706_v53, 4 }
 0x419   : > { %v708_v55 = vadd.f32 %v707_v54, %v706_v53 }
 0x41b   : > { %v709_v57 = vrot.slane %v708_v55, 2  ;;  %v701_v58 = vpop.f32.mrf.mxu2 }
 0x41c   : > { %v705_v59 = vmul.f32 %v701_v58, %v595_v56 }
 0x41d   : > { %v710_v60 = vadd.f32 %v709_v57, %v708_v55 }
 0x41e   : > { %v713_v61 = vsel %vm404_vm1, %v705_v59, 0.0 }
 0x41f   : > { %v714_v62 = vrot.slane %v713_v61, 4  ;;  %v711_v63 = vrot.slane %v710_v60, 1 }
 0x421   : > { %v715_v0 = vadd.f32 %v714_v62, %v713_v61  ;;  %v712_v2 = vadd.f32 %v711_v63, %v710_v60 }
 0x423   : > { %v716_v1 = vrot.slane %v715_v0, 2  ;;  %v725_v5 = vpack.c.bf16 %v712_v2, %v712_v2 }
 0x425   : > { %v717_v3 = vadd.f32 %v716_v1, %v715_v0  ;;  %v731_v8 = vunpack.c.l.b16 %v725_v5 }
 0x427   : > { %v718_v4 = vrot.slane %v717_v3, 1 }
 0x429   : > { %v719_v6 = vadd.f32 %v718_v4, %v717_v3 }
 0x42b   : > { %v726_v7 = vpack.c.bf16 %v719_v6, %v719_v6 }
 0x42d   : > { %v732_v9 = vunpack.c.l.b16 %v726_v7 }
 0x42f   : > { %v734_v10 = vsel %vm733_vm9, %v732_v9, %v731_v8  ;;  %v1221_v8 = vld [vmem:[%s1471_s14 + $0x9] ss:$0 sm:$0xff] }
 0x430   : > { %v735_v11 = vpack.c.b16 %v734_v10, %v734_v10 }
 0x432   : > { %1105 = vmatmul.msk.bf16.vlgmr.msrb.gmra.mxu3 %vm404_vm1, %v735_v11  ;;  %v1222_v11 = vld [vmem:[%s1471_s14 + $0xa] ss:$0 sm:$0xff] }
 0x4b5   : > { %v760_v13 = vpop.f32.mrf.mxu3 }
 0x4b6   : > { %v761_v14 = vadd.f32 %v1216_v12, %v760_v13 }
 0x4b8   : > { %v764_v15 = vadd.f32 %v761_v14, %v1504_v49 }
 0x4ba   : > { %v767_v16 = vsel %vm460_vm2, %v764_v15, 0.0 }
 0x4bb   : > { %768 = vadd.xlane.f32.xlu1 %v767_v16 }
 0x4bd   : > { %v762_v17 = vpop.f32.mrf.mxu3 }
 0x52e   : > { %v769_v18 = vpop.xlane.xlu1 %768 }
 0x52f   : > { %v770_v19 = vmul.f32 %v769_v18, %v1486_v24 }
 0x531   : > { %v771_v20 = vsub.f32 %v764_v15, %v770_v19 }
 0x533   : > { %v772_v21 = vmul.f32 %v771_v20, %v771_v20 }
 0x535   : > { %v773_v22 = vsel %vm460_vm2, %v772_v21, 0.0 }
 0x536   : > { %774 = vadd.xlane.f32.xlu1 %v773_v22 }
 0x5a9   : > { %v775_v49 = vpop.xlane.xlu1 %774 }
 0x5aa   : > { %v776_v27 = vmul.f32 %v775_v49, %v1486_v24 }
 0x5ac   : > { %v777_v29 = vadd.f32 1e-05, %v776_v27 }
 0x5ae   : > { %1235 = vrsqrt.f32 %v777_v29  ;;  %vm784_vm11 = vweird.f32 %v777_v29 }
 0x5b4   : > { %v1236_v31 = vpop.eup %1235 }
 0x5b5   : > { %v779_v33 = vmul.f32 %v1236_v31, %v777_v29  ;;  %vm785_vm10 = vweird.f32 %v1236_v31 }
 0x5b6   : > { %vm786_vm12 = vmor %vm784_vm11, %vm785_vm10 }
 0x5b7   : > { %v780_v34 = vmul.f32 %v1236_v31, %v779_v33 }
 0x5b9   : > { %v781_v35 = vmul.f32 0.5, %v780_v34 }
 0x5bb   : > { %v782_v36 = vsub.f32 1.5, %v781_v35 }
 0x5bd   : > { %v783_v37 = vmul.f32 %v1236_v31, %v782_v36 }
 0x5bf   : > { %v787_v39 = vsel %vm786_vm12, %v1236_v31, %v783_v37 }
 0x5c0   : > { %v788_v40 = vmul.f32 %v787_v39, %v771_v20 }
 0x5c2   : > { %v790_v41 = vmul.f32 %v1217_v38, %v788_v40 }
 0x5c4   : > { %v792_v42 = vadd.f32 %v1218_v32, %v790_v41 }
 0x5c6   : > { %v797_v43 = vpack.c.bf16 %v792_v42, %v792_v42 }
 0x5c8   : > { %1114 = vmatmul.msk.bf16.vlgmr.msra.gmra.mxu0 %vm404_vm1, %v797_v43 }
 0x645   : > { %v824_v46 = vpop.f32.mrf.mxu0 }
 0x646   : > { %v825_v47 = vadd.f32 %v1219_v45, %v824_v46 }
 0x648   : > { %v828_v48 = vmax.f32 %v825_v47, 0.0 }
 0x64a   : > { %v837_v50 = vpack.c.bf16 %v828_v48, %v828_v48 }
 0x64c   : > { %1131 = vmatmul.msk.bf16.vlgmr.msra.gmra.mxu1 %vm864_vm13, %v837_v50 }
 0x64d   : > { %v826_v51 = vpop.f32.mrf.mxu0 }
 0x6c9   : > { %v877_v53 = vpop.f32.mrf.mxu1 }
 0x6ca   : > { %v878_v54 = vadd.f32 %v1220_v52, %v877_v53 }
 0x6cc   : > { %v881_v55 = vadd.f32 %v878_v54, %v792_v42 }
 0x6ce   : > { %v884_v56 = vsel %vm460_vm2, %v881_v55, 0.0 }
 0x6cf   : > { %885 = vadd.xlane.f32.xlu2 %v884_v56 }
 0x6d1   : > { %v879_v57 = vpop.f32.mrf.mxu1 }
 0x742   : > { %v886_v58 = vpop.xlane.xlu2 %885 }
 0x743   : > { %v887_v59 = vmul.f32 %v886_v58, %v1486_v24 }
 0x745   : > { %v888_v60 = vsub.f32 %v881_v55, %v887_v59 }
 0x747   : > { %v889_v61 = vmul.f32 %v888_v60, %v888_v60 }
 0x749   : > { %v890_v62 = vsel %vm460_vm2, %v889_v61, 0.0 }
 0x74a   : > { %891 = vadd.xlane.f32.xlu2 %v890_v62 }
 0x7bd   : > { %v892_v63 = vpop.xlane.xlu2 %891 }
 0x7be   : > { %v893_v0 = vmul.f32 %v892_v63, %v1486_v24 }
 0x7c0   : > { %v894_v1 = vadd.f32 1e-05, %v893_v0 }
 0x7c2   : > { %1237 = vrsqrt.f32 %v894_v1  ;;  %vm901_vm15 = vweird.f32 %v894_v1 }
 0x7c8   : > { %v1238_v2 = vpop.eup %1237 }
 0x7c9   : > { %v896_v3 = vmul.f32 %v1238_v2, %v894_v1  ;;  %vm902_vm14 = vweird.f32 %v1238_v2 }
 0x7ca   : > { %vm903_vm0 = vmor %vm901_vm15, %vm902_vm14 }
 0x7cb   : > { %v897_v4 = vmul.f32 %v1238_v2, %v896_v3 }
 0x7cd   : > { %v898_v5 = vmul.f32 0.5, %v897_v4 }
 0x7cf   : > { %v899_v6 = vsub.f32 1.5, %v898_v5 }
 0x7d1   : > { %v900_v7 = vmul.f32 %v1238_v2, %v899_v6 }
 0x7d3   : > { %v904_v9 = vsel %vm903_vm0, %v1238_v2, %v900_v7 }
 0x7d4   : > { %v905_v10 = vmul.f32 %v904_v9, %v888_v60 }
 0x7d6   : > { %v907_v24 = vmul.f32 %v1221_v8, %v905_v10 }
 0x7d8   : > { %v909_v12 = vadd.f32 %v1222_v11, %v907_v24 }
 0x7da   : > { %910 = vst.msk [vmem:[#allocation5] sm:$0x3] %vm460_vm2, %v909_v12 }
 0x7db   : > { %1166 = dma.vmem_to_hbm [thread:$0]  (%p1174_p8), %s918_s11, 32, %s920_s16, [#allocation4]  }
 0x7dc   : > { %1318 = dma.done.wait (%p1174_p8), [#allocation4], 32  }
 0x7dd   : > { %1320 = vsyncadd (%p1174_p8), [#allocation4], 4294967264 }
 0x7de PF: > { %p19_p9 = scmp.ge.s32.totalorder %s1408_s10, 4   ;;  %s1585_s27 = smov %s1327_s28 }
 0x7df   : > { %s1586_s28 = smov %s1331_s29  ;;  %s1587_s29 = smov %s1418_s13 }
 0x7e0   : > { %s1588_s30 = smov %s1408_s10  ;;  %21 = sbr.rel (!%p19_p9) target bundleno = 4 (0x4), region = 107 }
 0x7e5   :  { %933 = vsyncpa [#allocation3], 1 }
 0x7e6   :  { %935 = vsyncpa [#allocation3 + $0x1], 1 }
 0x7e7   :  { %936 = vsyncpa [#allocation4], 1 }
 0x7e8   :  { %938 = vsyncpa [#allocation4 + $0x1], 1 }

</bundles_post_ra>
